<compile_context>
chip_gen: v5e
topology: v5e:2x2
jax: 0.10.0
libtpu: 0.0.40
codegen_flags: <defaults>
</compile_context>

<pallas_src>
from dataclasses import dataclass

import jax
import jax.numpy as jnp
from jax.experimental import pallas as pl
from jax.experimental.pallas import tpu as pltpu


# --------------------------------------------------------------------------
# Helpers
# --------------------------------------------------------------------------

def _intermediate_size(hidden_size: int) -> int:
    hidden_ratio = 2
    intermediate_size = int(hidden_size * hidden_ratio * 2 / 3)
    intermediate_size = 256 * ((intermediate_size + 256 - 1) // 256)
    return intermediate_size


def _round_up(x: int, m: int) -> int:
    return ((x + m - 1) // m) * m


def _vmem_capacity_bytes() -> int:
    """Physical VMEM per TensorCore; conservative (v7x) fallback if unknown."""
    try:
        info = pltpu.get_tpu_info()
        cap = getattr(info, "vmem_capacity_bytes", None)
        if cap:
            return int(cap)
    except Exception:
        pass
    return 64 << 20


# --------------------------------------------------------------------------
# Kernels
# --------------------------------------------------------------------------

def _mlp_resident_kernel(x_ref, wg_ref, wd_ref, o_ref):
    """Weights-resident path: full-I swiglu + down_proj per row tile."""
    ip = wg_ref.shape[1] // 2
    x = x_ref[...]
    y = jnp.dot(x, wg_ref[...], preferred_element_type=jnp.float32)
    gate = y[:, :ip]
    up = y[:, ip:]
    z = gate * jax.nn.sigmoid(gate) * up            # swish(gate) * up, f32
    o_ref[...] = jnp.dot(z.astype(wd_ref.dtype), wd_ref[...],
                         preferred_element_type=jnp.float32).astype(o_ref.dtype)


def _mlp_tiled_f32out_kernel(x_ref, wg_ref, wd_ref, o_ref):
    """I-tiled path, f32 output: accumulate directly into the resident o block."""
    ti = wd_ref.shape[0]
    k = pl.program_id(1)

    @pl.when(k == 0)
    def _():
        o_ref[...] = jnp.zeros_like(o_ref)

    x = x_ref[...]
    y = jnp.dot(x, wg_ref[...], preferred_element_type=jnp.float32)
    gate = y[:, :ti]
    up = y[:, ti:]
    z = gate * jax.nn.sigmoid(gate) * up
    o_ref[...] += jnp.dot(z.astype(wd_ref.dtype), wd_ref[...],
                          preferred_element_type=jnp.float32)


def _mlp_tiled_acc_kernel(x_ref, wg_ref, wd_ref, o_ref, acc_ref):
    """I-tiled path, non-f32 output: f32 scratch accumulator, cast at the end."""
    ti = wd_ref.shape[0]
    k = pl.program_id(1)

    @pl.when(k == 0)
    def _():
        acc_ref[...] = jnp.zeros_like(acc_ref)

    x = x_ref[...]
    y = jnp.dot(x, wg_ref[...], preferred_element_type=jnp.float32)
    gate = y[:, :ti]
    up = y[:, ti:]
    z = gate * jax.nn.sigmoid(gate) * up
    acc_ref[...] += jnp.dot(z.astype(wd_ref.dtype), wd_ref[...],
                            preferred_element_type=jnp.float32)

    @pl.when(k == pl.num_programs(1) - 1)
    def _():
        o_ref[...] = acc_ref[...].astype(o_ref.dtype)


# --------------------------------------------------------------------------
# Plan / prepare / apply
# --------------------------------------------------------------------------

@dataclass(frozen=True)
class MLPPlan:
    H: int
    I: int
    Hp: int
    Ip: int
    tm: int
    ti: int
    resident: bool
    compute_dtype: object
    out_dtype: object
    vmem_limit: int


def plan_retnet_mlp(M, H, I, out_dtype, compute_dtype=None, tm=None, ti=512,
                    force_tiled=False):
    """Static tiling/layout plan (depends only on shapes, dtypes, hardware)."""
    out_dtype = jnp.dtype(out_dtype)
    cd = jnp.dtype(compute_dtype) if compute_dtype is not None else out_dtype
    cb = cd.itemsize
    ob = out_dtype.itemsize

    Hp = _round_up(H, 128)
    budget = int(_vmem_capacity_bytes() * 0.85)

    # Row tile: roofline- and dtype-aware default (weight-streaming needs
    # tm >~ 650 FLOP/byte on v6e/v7x to be MXU-bound), clamped to the actual
    # row count and guaranteeing >=2 tiles (v7x dual TC) whenever M > 16.
    if tm is None:
        tm = 1024 if cb <= 2 else 512
    tm = max(16, _round_up(min(tm, _round_up(M, 16)), 16))
    if _round_up(M, tm) // tm < 2 and M > 16:
        tm = _round_up(pl.cdiv(M, 2), 16)

    Ip_res = _round_up(I, 128)

    def est_resident(tm_):
        w = (Hp * 2 * Ip_res + Ip_res * Hp) * cb          # fused wg + wd
        io = tm_ * Hp * (cb + ob)                         # x tile + out tile
        tmp = tm_ * (3 * Ip_res + Hp) * 4                 # f32 y, z, down result
        return 2 * (w + io) + tmp                         # 2x: double buffering

    def est_tiled(tm_, ti_):
        w = (Hp * 2 * ti_ + ti_ * Hp) * cb
        io = tm_ * Hp * (cb + ob)
        acc = 0 if out_dtype == jnp.float32 else tm_ * Hp * 4
        tmp = tm_ * (3 * ti_ + Hp) * 4
        return 2 * (w + io) + acc + tmp

    # --- Weights-resident fast path: weights DMA'd once for the whole call.
    if not force_tiled:
        tm_r = tm
        while tm_r > 64 and est_resident(tm_r) > budget:
            tm_r = max(16, _round_up(tm_r // 2, 16))
        if est_resident(tm_r) <= budget:
            return MLPPlan(H=H, I=I, Hp=Hp, Ip=Ip_res, tm=tm_r, ti=Ip_res,
                           resident=True, compute_dtype=cd, out_dtype=out_dtype,
                           vmem_limit=budget)

    # --- I-tiled fallback path.
    ti_t = min(_round_up(max(ti, 128), 128), _round_up(I, 128))
    tm_t = tm
    while est_tiled(tm_t, ti_t) > budget:
        if ti_t > 256:
            ti_t -= 128
        elif tm_t > 256:
            tm_t = _round_up(tm_t // 2, 16)
        elif ti_t > 128:
            ti_t -= 128
        elif tm_t > 16:
            tm_t = _round_up(tm_t // 2, 16)
        else:
            break
    Ip_t = _round_up(I, ti_t)   # padded I; padded gate/up cols and wd rows are 0
    return MLPPlan(H=H, I=I, Hp=Hp, Ip=Ip_t, tm=tm_t, ti=ti_t,
                   resident=False, compute_dtype=cd, out_dtype=out_dtype,
                   vmem_limit=budget)


def prepare_retnet_mlp_weights(wg_t, wd_t, plan):
    """One-time weight preprocessing (cast, split, pad, per-chunk interleave).

    wg_t: (H, 2*I)  gate_proj weight, transposed vs PyTorch; columns = [gate|up]
    wd_t: (I, H)    down_proj weight, transposed vs PyTorch
    """
    H, I, Hp, Ip = plan.H, plan.I, plan.Hp, plan.Ip
    cd = plan.compute_dtype
    gate = jnp.pad(wg_t[:, :I].astype(cd), ((0, Hp - H), (0, Ip - I)))
    up = jnp.pad(wg_t[:, I:].astype(cd), ((0, Hp - H), (0, Ip - I)))
    if plan.resident:
        wg_p = jnp.concatenate([gate, up], axis=1)                   # (Hp, 2*Ip)
    else:
        nk = Ip // plan.ti
        # Per-k-chunk layout [gate_k | up_k] so one fused dot per step yields
        # contiguous gate/up halves in the (tm, 2*ti) result.
        wg_p = jnp.concatenate(
            [gate.reshape(Hp, nk, 1, plan.ti),
             up.reshape(Hp, nk, 1, plan.ti)], axis=2).reshape(Hp, 2 * Ip)
    wd_p = jnp.pad(wd_t.astype(cd), ((0, Ip - I), (0, Hp - H)))      # (Ip, Hp)
    return wg_p, wd_p


def retnet_mlp_apply(x, wg_p, wd_p, plan):
    """Forward pass with pre-prepared weights."""
    B, T, H = x.shape
    assert H == plan.H
    M = B * T
    Mp = _round_up(M, plan.tm)
    Hp, Ip, tm, ti = plan.Hp, plan.Ip, plan.tm, plan.ti

    x2d = x.reshape(M, H)
    if x2d.dtype != plan.compute_dtype:
        x2d = x2d.astype(plan.compute_dtype)
    if (Mp - M) or (Hp - H):
        x2d = jnp.pad(x2d, ((0, Mp - M), (0, Hp - H)))

    n_rows = Mp // tm
    cparams_kwargs = dict(vmem_limit_bytes=int(plan.vmem_limit))

    if plan.resident:
        out2d = pl.pallas_call(
            _mlp_resident_kernel,
            out_shape=jax.ShapeDtypeStruct((Mp, Hp), plan.out_dtype),
            grid_spec=pltpu.PrefetchScalarGridSpec(
                num_scalar_prefetch=0,
                grid=(n_rows,),
                in_specs=[
                    pl.BlockSpec((tm, Hp), lambda i: (i, 0)),
                    # Constant index -> weights are DMA'd from HBM exactly once.
                    pl.BlockSpec((Hp, 2 * Ip), lambda i: (0, 0)),
                    pl.BlockSpec((Ip, Hp), lambda i: (0, 0)),
                ],
                out_specs=pl.BlockSpec((tm, Hp), lambda i: (i, 0)),
            ),
            compiler_params=pltpu.CompilerParams(
                dimension_semantics=("parallel",), **cparams_kwargs),
        )(x2d, wg_p, wd_p)
    else:
        nk = Ip // ti
        if plan.out_dtype == jnp.float32:
            kernel = _mlp_tiled_f32out_kernel
            scratch = []
        else:
            kernel = _mlp_tiled_acc_kernel
            scratch = [pltpu.VMEM((tm, Hp), jnp.float32)]
        out2d = pl.pallas_call(
            kernel,
            out_shape=jax.ShapeDtypeStruct((Mp, Hp), plan.out_dtype),
            grid_spec=pltpu.PrefetchScalarGridSpec(
                num_scalar_prefetch=0,
                grid=(n_rows, nk),
                in_specs=[
                    pl.BlockSpec((tm, Hp), lambda i, k: (i, 0)),
                    pl.BlockSpec((Hp, 2 * ti), lambda i, k: (0, k)),
                    pl.BlockSpec((ti, Hp), lambda i, k: (k, 0)),
                ],
                out_specs=pl.BlockSpec((tm, Hp), lambda i, k: (i, 0)),
                scratch_shapes=scratch,
            ),
            compiler_params=pltpu.CompilerParams(
                dimension_semantics=("parallel", "arbitrary"), **cparams_kwargs),
        )(x2d, wg_p, wd_p)

    return out2d[:M, :H].reshape(B, T, H)


def retnet_mlp(x, wg_t, wd_t, *, compute_dtype=None, tm=None, ti=512,
               force_tiled=False):
    """Convenience wrapper: plan + prepare + apply (prepare is per-call here;
    production callers should call prepare_retnet_mlp_weights once)."""
    B, T, H = x.shape
    I = wd_t.shape[0]
    assert wg_t.shape == (H, 2 * I) and wd_t.shape == (I, H)
    plan = plan_retnet_mlp(B * T, H, I, x.dtype, compute_dtype, tm, ti,
                           force_tiled)
    wg_p, wd_p = prepare_retnet_mlp_weights(wg_t, wd_t, plan)
    return retnet_mlp_apply(x, wg_p, wd_p, plan)


# --------------------------------------------------------------------------
# Pure-JAX reference (same dtype policy as the kernel)
# --------------------------------------------------------------------------

def retnet_mlp_reference(x, wg_t, wd_t, compute_dtype=None):
    I = wd_t.shape[0]
    cd = jnp.dtype(compute_dtype) if compute_dtype is not None else x.dtype
    B, T, H = x.shape
    x2d = x.reshape(-1, H).astype(cd)
    y = jnp.dot(x2d, wg_t.astype(cd), preferred_element_type=jnp.float32)
    gate, up = y[:, :I], y[:, I:]
    z = gate * jax.nn.sigmoid(gate) * up
    out = jnp.dot(z.astype(cd), wd_t.astype(cd),
                  preferred_element_type=jnp.float32)
    return out.reshape(B, T, H).astype(x.dtype)


# --------------------------------------------------------------------------
# Self-test
# --------------------------------------------------------------------------

if __name__ == "__main__":
    # --- 1) Module-default small f32 case (weights-resident fast path) ------
    hidden_size = 32
    inter = _intermediate_size(hidden_size)        # 256
    B, T = 2, 8
    kx, kg, kd = jax.random.split(jax.random.PRNGKey(0), 3)
    x = jax.random.normal(kx, (B, T, hidden_size), dtype=jnp.float32)
    wg_t = (jax.random.normal(kg, (hidden_size, 2 * inter), dtype=jnp.float32)
            * (1.0 / jnp.sqrt(hidden_size)))
    wd_t = (jax.random.normal(kd, (inter, hidden_size), dtype=jnp.float32)
            * (1.0 / jnp.sqrt(inter)))

    out = jax.block_until_ready(retnet_mlp(x, wg_t, wd_t))
    ref = retnet_mlp_reference(x, wg_t, wd_t)
    assert out.shape == (B, T, hidden_size)
    assert jnp.allclose(out, ref, atol=1e-4, rtol=1e-4), "f32 resident mismatch"

    # --- 2) bf16-compute, f32 output, forced I-tiled path (f32-out kernel) --
    hidden_size2 = 256
    inter2 = _intermediate_size(hidden_size2)      # 512
    B2, T2 = 2, 64                                 # M = 128 rows -> 2 row tiles
    k2x, k2g, k2d = jax.random.split(jax.random.PRNGKey(1), 3)
    x2 = jax.random.normal(k2x, (B2, T2, hidden_size2), dtype=jnp.float32)
    wg2 = (jax.random.normal(k2g, (hidden_size2, 2 * inter2), dtype=jnp.float32)
           * (1.0 / jnp.sqrt(hidden_size2)))
    wd2 = (jax.random.normal(k2d, (inter2, hidden_size2), dtype=jnp.float32)
           * (1.0 / jnp.sqrt(inter2)))
    out2 = jax.block_until_ready(
        retnet_mlp(x2, wg2, wd2, compute_dtype=jnp.bfloat16, ti=256,
                   force_tiled=True))
    ref2 = retnet_mlp_reference(x2, wg2, wd2, compute_dtype=jnp.bfloat16)
    assert out2.shape == (B2, T2, hidden_size2)
    assert jnp.allclose(out2.astype(jnp.float32), ref2.astype(jnp.float32),
                        atol=5e-2, rtol=5e-2), "bf16-compute tiled mismatch"

    # --- 3) bf16 input/output, forced I-tiled path (scratch-accum kernel) ---
    hidden_size3 = 64
    inter3 = _intermediate_size(hidden_size3)      # 256
    B3, T3 = 2, 16                                 # M = 32 rows -> 2 row tiles
    k3x, k3g, k3d = jax.random.split(jax.random.PRNGKey(2), 3)
    x3 = jax.random.normal(k3x, (B3, T3, hidden_size3),
                           dtype=jnp.float32).astype(jnp.bfloat16)
    wg3 = (jax.random.normal(k3g, (hidden_size3, 2 * inter3), dtype=jnp.float32)
           * (1.0 / jnp.sqrt(hidden_size3))).astype(jnp.bfloat16)
    wd3 = (jax.random.normal(k3d, (inter3, hidden_size3), dtype=jnp.float32)
           * (1.0 / jnp.sqrt(inter3))).astype(jnp.bfloat16)
    out3 = jax.block_until_ready(
        retnet_mlp(x3, wg3, wd3, ti=128, force_tiled=True))
    ref3 = retnet_mlp_reference(x3, wg3, wd3)
    assert out3.shape == (B3, T3, hidden_size3)
    assert jnp.allclose(out3.astype(jnp.float32), ref3.astype(jnp.float32),
                        atol=3e-2, rtol=3e-2), "bf16 output tiled mismatch"

    print("KERNEL_OK")
</pallas_src>

<mosaic_0001>
module attributes {stable_mosaic.version = 11 : i64} {
  func.func @_mlp_resident_kernel(%arg0: i32, %arg1: memref<16x128xf32, #tpu.memory_space<vmem>>, %arg2: memref<128x512xf32, #tpu.memory_space<vmem>>, %arg3: memref<256x128xf32, #tpu.memory_space<vmem>>, %arg4: memref<16x128xf32, #tpu.memory_space<vmem>>) attributes {dimension_semantics = [#tpu.dimension_semantics<parallel>], iteration_bounds = array<i64: 1>, scalar_prefetch = 0 : i64, scratch_operands = 0 : i64, tpu.core_type = #tpu.core_type<tc>, window_params = [{transform_indices = @transform_0, window_bounds = array<i64: 16, 128>}, {pipeline_mode = #tpu.pipeline_mode<synchronous>, transform_indices = @transform_1, window_bounds = array<i64: 128, 512>}, {pipeline_mode = #tpu.pipeline_mode<synchronous>, transform_indices = @transform_2, window_bounds = array<i64: 256, 128>}, {transform_indices = @transform_3, window_bounds = array<i64: 16, 128>}]} {
    %c0 = arith.constant 0 : index
    %c0_0 = arith.constant 0 : index
    %0 = vector.load %arg1[%c0, %c0_0] : memref<16x128xf32, #tpu.memory_space<vmem>>, vector<16x128xf32>
    %c0_1 = arith.constant 0 : index
    %c0_2 = arith.constant 0 : index
    %1 = vector.load %arg2[%c0_1, %c0_2] : memref<128x512xf32, #tpu.memory_space<vmem>>, vector<128x512xf32>
    %cst = arith.constant dense<0.000000e+00> : vector<16x512xf32>
    %2 = tpu.matmul %0, %1, %cst {dimension_numbers = #tpu.dot_dimension_numbers<[1], [0], [0], [1], [0, 0, 1, 1], [], []>} : vector<16x128xf32>, vector<128x512xf32>, vector<16x512xf32> -> vector<16x512xf32>
    %3 = vector.extract_strided_slice %2 {offsets = [0, 0], sizes = [16, 256], strides = [1, 1]} : vector<16x512xf32> to vector<16x256xf32>
    %4 = vector.extract_strided_slice %2 {offsets = [0, 256], sizes = [16, 256], strides = [1, 1]} : vector<16x512xf32> to vector<16x256xf32>
    %5 = arith.negf %3 : vector<16x256xf32>
    %6 = math.exp %5 : vector<16x256xf32>
    %cst_3 = arith.constant 1.000000e+00 : f32
    %7 = vector.broadcast %cst_3 : f32 to vector<16x256xf32>
    %8 = arith.addf %7, %6 : vector<16x256xf32>
    %9 = arith.divf %7, %8 : vector<16x256xf32>
    %10 = arith.mulf %3, %9 : vector<16x256xf32>
    %11 = arith.mulf %10, %4 : vector<16x256xf32>
    %c0_4 = arith.constant 0 : index
    %c0_5 = arith.constant 0 : index
    %12 = vector.load %arg3[%c0_4, %c0_5] : memref<256x128xf32, #tpu.memory_space<vmem>>, vector<256x128xf32>
    %cst_6 = arith.constant dense<0.000000e+00> : vector<16x128xf32>
    %13 = tpu.matmul %11, %12, %cst_6 {dimension_numbers = #tpu.dot_dimension_numbers<[1], [0], [0], [1], [0, 0, 1, 1], [], []>} : vector<16x256xf32>, vector<256x128xf32>, vector<16x128xf32> -> vector<16x128xf32>
    %c0_7 = arith.constant 0 : index
    %c0_8 = arith.constant 0 : index
    %14 = vector.load %arg4[%c0_7, %c0_8] : memref<16x128xf32, #tpu.memory_space<vmem>>, vector<16x128xf32>
    tpu.vector_store %arg4[%c0_7, %c0_8], %13 {strides = array<i32>} : memref<16x128xf32, #tpu.memory_space<vmem>>, vector<16x128xf32>,
    return
  }
  func.func @transform_0(%arg0: i32) -> (i32, i32) {
    %c0_i32 = arith.constant 0 : i32
    %c0_i32_0 = arith.constant 0 : i32
    return %arg0, %c0_i32 : i32, i32
  }
  func.func @transform_1(%arg0: i32) -> (i32, i32) {
    %c0_i32 = arith.constant 0 : i32
    %c0_i32_0 = arith.constant 0 : i32
    %c0_i32_1 = arith.constant 0 : i32
    return %c0_i32, %c0_i32_0 : i32, i32
  }
  func.func @transform_2(%arg0: i32) -> (i32, i32) {
    %c0_i32 = arith.constant 0 : i32
    %c0_i32_0 = arith.constant 0 : i32
    %c0_i32_1 = arith.constant 0 : i32
    return %c0_i32, %c0_i32_0 : i32, i32
  }
  func.func @transform_3(%arg0: i32) -> (i32, i32) {
    %c0_i32 = arith.constant 0 : i32
    %c0_i32_0 = arith.constant 0 : i32
    return %arg0, %c0_i32 : i32, i32
  }
}

</mosaic_0001>

<bundles_post_ra>
// kernel: tpu_custom_call.1
= control target key start
LH: loop header
LB: loop body
LE: loop exit
PB: predicated region body
PF: predicated region fallthrough
CT: control target
= control target key end

     0   :  { %8 = vsyncpa [#allocation3], 0  ;;  %s631_s0 = inlined_call_operand.hbm [shape: f32[16,128], index: 0, kind: input, shape index: {}]   ;;  %s632_s1 = inlined_call_operand.hbm [shape: f32[128,512], index: 1, kind: input, shape index: {}]   ;;  %s633_s2 = inlined_call_operand.hbm [shape: f32[256,128], index: 2, kind: input, shape index: {}]   ;;  %s634_s3 = inlined_call_operand.hbm [shape: f32[16,128], index: 3, kind: output, shape index: {}]  }
   0x1   :  { %9 = vsyncpa [#allocation6], 0  ;;  %s28_s14 = sshll.u32 %s632_s1, 4  ;;  %s29_s14 = int_to_ptr.hbm [resolvable:$true] %s28_s14 }
   0x2   :  { %10 = vsyncpa [#allocation4], 0  ;;  %s566_s15 = smov [#allocation5]   ;;  %s15_s19 = sshll.u32 %s631_s0, 4  ;;  %s16_s19 = int_to_ptr.hbm [resolvable:$true] %s15_s19 }
   0x3   :  { %s30_s16 = sshll.u32 %s566_s15, 4  ;;  %s567_s20 = smov 512   ;;  %s31_s16 = int_to_ptr.vmem [resolvable:$true] %s30_s16 }
   0x4   :  { %s568_s21 = smov 32   ;;  %s569_s22 = smov [#allocation2]  }
   0x5   :  { %36 = dma.hbm_to_vmem [thread:$0]  %s29_s14, 8192, %s31_s16, [#allocation6], %s567_s20, %s567_s20, %s568_s21  }
   0x6   :  { %s17_s23 = sshll.u32 %s569_s22, 4  ;;  %s570_s24 = smov 128   ;;  %s18_s23 = int_to_ptr.vmem [resolvable:$true] %s17_s23 }
   0x7   :  { %s571_s25 = smov 8   ;;  %s41_s27 = sshll.u32 %s633_s2, 4  ;;  %s42_s27 = int_to_ptr.hbm [resolvable:$true] %s41_s27 }
   0x8   :  { %23 = dma.hbm_to_vmem [thread:$0]  %s16_s19, 256, %s18_s23, [#allocation3], %s570_s24, %s570_s24, %s571_s25  }
   0x9   :  { %s572_s28 = smov [#allocation7]  }
   0xa   :  { %s43_s0 = sshll.u32 %s572_s28, 4  ;;  %s44_s0 = int_to_ptr.vmem [resolvable:$true] %s43_s0 }
   0xb   :  { %49 = dma.hbm_to_vmem [thread:$0]  %s42_s27, 4096, %s44_s0, [#allocation6], %s570_s24, %s570_s24, %s571_s25  }
   0xc   :  { %560 = dma.done.wait [#allocation3], 256  }
   0xd   :  { %561 = vsyncadd [#allocation3], 4294967040 }
   0xe   :  { %562 = dma.done.wait [#allocation6], 12288  }
   0xf   :  { %563 = vsyncadd [#allocation6], 4294955008  ;;  %v124_v0 = vld [vmem:[#allocation5 + $0x1e0] sm:$0xff]  ;;  %v125_v1 = vld [vmem:[#allocation5 + $0x1e8] sm:$0xff]  ;;  %s573_s2 = smov [#allocation8]   ;;  %s390_s5 = sshll.u32 %s634_s3, 4  ;;  %s391_s5 = int_to_ptr.hbm [resolvable:$true] %s390_s5 }
  0x10   :  { %v120_v2 = vld [vmem:[#allocation5 + $0x1c0] sm:$0xff]  ;;  %128 = vmatpush.msra.mxu0 %v124_v0  ;;  %151 = vmatpush.msra.mxu1 %v125_v1  ;;  %v121_v3 = vld [vmem:[#allocation5 + $0x1c8] sm:$0xff]  ;;  %v126_v12 = vld [vmem:[#allocation5 + $0x1f0] sm:$0xff]  ;;  %s388_s29 = sshll.u32 %s573_s2, 4  ;;  %s389_s29 = int_to_ptr.vmem [resolvable:$true] %s388_s29 }
  0x11   :  { %v116_v4 = vld [vmem:[#allocation5 + $0x1a0] sm:$0xff]  ;;  %v117_v5 = vld [vmem:[#allocation5 + $0x1a8] sm:$0xff]  ;;  %v127_v14 = vld [vmem:[#allocation5 + $0x1f8] sm:$0xff]  ;;  %174 = vmatpush.msra.mxu2 %v126_v12 }
  0x12   :  { %129 = vmatpush.msra.mxu0 %v120_v2  ;;  %152 = vmatpush.msra.mxu1 %v121_v3  ;;  %v112_v6 = vld [vmem:[#allocation5 + $0x180] sm:$0xff]  ;;  %v113_v7 = vld [vmem:[#allocation5 + $0x188] sm:$0xff]  ;;  %v122_v16 = vld [vmem:[#allocation5 + $0x1d0] sm:$0xff] }
  0x13   :  { %v108_v8 = vld [vmem:[#allocation5 + $0x160] sm:$0xff]  ;;  %v109_v9 = vld [vmem:[#allocation5 + $0x168] sm:$0xff]  ;;  %197 = vmatpush.msra.mxu3 %v127_v14  ;;  %v123_v17 = vld [vmem:[#allocation5 + $0x1d8] sm:$0xff]  ;;  %175 = vmatpush.msra.mxu2 %v122_v16 }
  0x14   :  { %130 = vmatpush.msra.mxu0 %v116_v4  ;;  %153 = vmatpush.msra.mxu1 %v117_v5  ;;  %v104_v10 = vld [vmem:[#allocation5 + $0x140] sm:$0xff]  ;;  %v105_v11 = vld [vmem:[#allocation5 + $0x148] sm:$0xff]  ;;  %v118_v18 = vld [vmem:[#allocation5 + $0x1b0] sm:$0xff] }
  0x15   :  { %v100_v13 = vld [vmem:[#allocation5 + $0x120] sm:$0xff]  ;;  %v101_v15 = vld [vmem:[#allocation5 + $0x128] sm:$0xff]  ;;  %v119_v19 = vld [vmem:[#allocation5 + $0x1b8] sm:$0xff]  ;;  %198 = vmatpush.msra.mxu3 %v123_v17  ;;  %176 = vmatpush.msra.mxu2 %v118_v18 }
  0x16   :  { %131 = vmatpush.msra.mxu0 %v112_v6  ;;  %154 = vmatpush.msra.mxu1 %v113_v7  ;;  %v96_v20 = vld [vmem:[#allocation5 + $0x100] sm:$0xff]  ;;  %v97_v21 = vld [vmem:[#allocation5 + $0x108] sm:$0xff]  ;;  %v114_v22 = vld [vmem:[#allocation5 + $0x190] sm:$0xff] }
  0x17   :  { %v115_v23 = vld [vmem:[#allocation5 + $0x198] sm:$0xff]  ;;  %v92_v24 = vld [vmem:[#allocation5 + $0xe0] sm:$0xff]  ;;  %v93_v25 = vld [vmem:[#allocation5 + $0xe8] sm:$0xff]  ;;  %199 = vmatpush.msra.mxu3 %v119_v19  ;;  %177 = vmatpush.msra.mxu2 %v114_v22 }
  0x18   :  { %132 = vmatpush.msra.mxu0 %v108_v8  ;;  %155 = vmatpush.msra.mxu1 %v109_v9  ;;  %v110_v26 = vld [vmem:[#allocation5 + $0x170] sm:$0xff]  ;;  %v111_v27 = vld [vmem:[#allocation5 + $0x178] sm:$0xff]  ;;  %v88_v28 = vld [vmem:[#allocation5 + $0xc0] sm:$0xff] }
  0x19   :  { %v89_v29 = vld [vmem:[#allocation5 + $0xc8] sm:$0xff]  ;;  %200 = vmatpush.msra.mxu3 %v115_v23  ;;  %v106_v30 = vld [vmem:[#allocation5 + $0x150] sm:$0xff]  ;;  %v107_v31 = vld [vmem:[#allocation5 + $0x158] sm:$0xff]  ;;  %178 = vmatpush.msra.mxu2 %v110_v26 }
  0x1a   :  { %133 = vmatpush.msra.mxu0 %v104_v10  ;;  %156 = vmatpush.msra.mxu1 %v105_v11  ;;  %v84_v32 = vld [vmem:[#allocation5 + $0xa0] sm:$0xff]  ;;  %v85_v33 = vld [vmem:[#allocation5 + $0xa8] sm:$0xff]  ;;  %v102_v34 = vld [vmem:[#allocation5 + $0x130] sm:$0xff] }
  0x1b   :  { %201 = vmatpush.msra.mxu3 %v111_v27  ;;  %v103_v35 = vld [vmem:[#allocation5 + $0x138] sm:$0xff]  ;;  %v80_v36 = vld [vmem:[#allocation5 + $0x80] sm:$0xff]  ;;  %v81_v37 = vld [vmem:[#allocation5 + $0x88] sm:$0xff]  ;;  %179 = vmatpush.msra.mxu2 %v106_v30 }
  0x1c   :  { %134 = vmatpush.msra.mxu0 %v100_v13  ;;  %157 = vmatpush.msra.mxu1 %v101_v15  ;;  %v98_v38 = vld [vmem:[#allocation5 + $0x110] sm:$0xff]  ;;  %v99_v39 = vld [vmem:[#allocation5 + $0x118] sm:$0xff]  ;;  %v76_v40 = vld [vmem:[#allocation5 + $0x60] sm:$0xff] }
  0x1d   :  { %202 = vmatpush.msra.mxu3 %v107_v31  ;;  %v77_v41 = vld [vmem:[#allocation5 + $0x68] sm:$0xff]  ;;  %180 = vmatpush.msra.mxu2 %v102_v34  ;;  %v94_v42 = vld [vmem:[#allocation5 + $0xf0] sm:$0xff]  ;;  %v95_v43 = vld [vmem:[#allocation5 + $0xf8] sm:$0xff] }
  0x1e   :  { %135 = vmatpush.msra.mxu0 %v96_v20  ;;  %158 = vmatpush.msra.mxu1 %v97_v21  ;;  %v72_v44 = vld [vmem:[#allocation5 + $0x40] sm:$0xff]  ;;  %v73_v45 = vld [vmem:[#allocation5 + $0x48] sm:$0xff]  ;;  %v90_v46 = vld [vmem:[#allocation5 + $0xd0] sm:$0xff] }
  0x1f   :  { %203 = vmatpush.msra.mxu3 %v103_v35  ;;  %181 = vmatpush.msra.mxu2 %v98_v38  ;;  %v91_v47 = vld [vmem:[#allocation5 + $0xd8] sm:$0xff]  ;;  %v68_v48 = vld [vmem:[#allocation5 + $0x20] sm:$0xff]  ;;  %v69_v49 = vld [vmem:[#allocation5 + $0x28] sm:$0xff] }
  0x20   :  { %136 = vmatpush.msra.mxu0 %v92_v24  ;;  %159 = vmatpush.msra.mxu1 %v93_v25  ;;  %v86_v50 = vld [vmem:[#allocation5 + $0xb0] sm:$0xff]  ;;  %v87_v51 = vld [vmem:[#allocation5 + $0xb8] sm:$0xff]  ;;  %v64_v52 = vld [vmem:[#allocation5] sm:$0xff] }
  0x21   :  { %204 = vmatpush.msra.mxu3 %v99_v39  ;;  %182 = vmatpush.msra.mxu2 %v94_v42  ;;  %v65_v53 = vld [vmem:[#allocation5 + $0x8] sm:$0xff]  ;;  %v62_v54 = vld [vmem:[#allocation2] sm:$0xff]  ;;  %v83_v56 = vld [vmem:[#allocation5 + $0x98] sm:$0xff] }
  0x22   :  { %137 = vmatpush.msra.mxu0 %v88_v28  ;;  %160 = vmatpush.msra.mxu1 %v89_v29  ;;  %v82_v55 = vld [vmem:[#allocation5 + $0x90] sm:$0xff]  ;;  %v79_v58 = vld [vmem:[#allocation5 + $0x78] sm:$0xff]  ;;  %v317_v6 = vld [vmem:[#allocation7 + $0x68] sm:$0xff] }
  0x23   :  { %205 = vmatpush.msra.mxu3 %v95_v43  ;;  %183 = vmatpush.msra.mxu2 %v90_v46  ;;  %v78_v57 = vld [vmem:[#allocation5 + $0x70] sm:$0xff]  ;;  %v75_v60 = vld [vmem:[#allocation5 + $0x58] sm:$0xff]  ;;  %v333_v7 = vld [vmem:[#allocation7 + $0xe8] sm:$0xff] }
  0x24   :  { %138 = vmatpush.msra.mxu0 %v84_v32  ;;  %161 = vmatpush.msra.mxu1 %v85_v33  ;;  %v74_v59 = vld [vmem:[#allocation5 + $0x50] sm:$0xff]  ;;  %v71_v62 = vld [vmem:[#allocation5 + $0x38] sm:$0xff]  ;;  %v316_v8 = vld [vmem:[#allocation7 + $0x60] sm:$0xff] }
  0x25   :  { %206 = vmatpush.msra.mxu3 %v91_v47  ;;  %184 = vmatpush.msra.mxu2 %v86_v50  ;;  %v70_v61 = vld [vmem:[#allocation5 + $0x30] sm:$0xff]  ;;  %v63_v63 = vld [vmem:[#allocation2 + $0x8] sm:$0xff]  ;;  %v332_v9 = vld [vmem:[#allocation7 + $0xe0] sm:$0xff] }
  0x26   :  { %139 = vmatpush.msra.mxu0 %v80_v36  ;;  %162 = vmatpush.msra.mxu1 %v81_v37  ;;  %v66_v0 = vld [vmem:[#allocation5 + $0x10] sm:$0xff]  ;;  %v67_v1 = vld [vmem:[#allocation5 + $0x18] sm:$0xff]  ;;  %v313_v14 = vld [vmem:[#allocation7 + $0x48] sm:$0xff] }
  0x27   :  { %207 = vmatpush.msra.mxu3 %v87_v51  ;;  %185 = vmatpush.msra.mxu2 %v82_v55  ;;  %v319_v2 = vld [vmem:[#allocation7 + $0x78] sm:$0xff]  ;;  %v318_v4 = vld [vmem:[#allocation7 + $0x70] sm:$0xff]  ;;  %v329_v15 = vld [vmem:[#allocation7 + $0xc8] sm:$0xff] }
  0x28   :  { %140 = vmatpush.msra.mxu0 %v76_v40  ;;  %163 = vmatpush.msra.mxu1 %v77_v41  ;;  %v335_v3 = vld [vmem:[#allocation7 + $0xf8] sm:$0xff]  ;;  %v334_v5 = vld [vmem:[#allocation7 + $0xf0] sm:$0xff]  ;;  %v312_v16 = vld [vmem:[#allocation7 + $0x40] sm:$0xff] }
  0x29   :  { %208 = vmatpush.msra.mxu3 %v83_v56  ;;  %186 = vmatpush.msra.mxu2 %v78_v57  ;;  %v315_v10 = vld [vmem:[#allocation7 + $0x58] sm:$0xff]  ;;  %v314_v12 = vld [vmem:[#allocation7 + $0x50] sm:$0xff]  ;;  %v328_v17 = vld [vmem:[#allocation7 + $0xc0] sm:$0xff] }
  0x2a   :  { %141 = vmatpush.msra.mxu0 %v72_v44  ;;  %164 = vmatpush.msra.mxu1 %v73_v45  ;;  %v331_v11 = vld [vmem:[#allocation7 + $0xd8] sm:$0xff]  ;;  %v330_v13 = vld [vmem:[#allocation7 + $0xd0] sm:$0xff]  ;;  %v309_v22 = vld [vmem:[#allocation7 + $0x28] sm:$0xff] }
  0x2b   :  { %209 = vmatpush.msra.mxu3 %v79_v58  ;;  %187 = vmatpush.msra.mxu2 %v74_v59  ;;  %v311_v18 = vld [vmem:[#allocation7 + $0x38] sm:$0xff]  ;;  %v310_v20 = vld [vmem:[#allocation7 + $0x30] sm:$0xff]  ;;  %v325_v23 = vld [vmem:[#allocation7 + $0xa8] sm:$0xff] }
  0x2c   :  { %142 = vmatpush.msra.mxu0 %v68_v48  ;;  %165 = vmatpush.msra.mxu1 %v69_v49  ;;  %v327_v19 = vld [vmem:[#allocation7 + $0xb8] sm:$0xff]  ;;  %v326_v21 = vld [vmem:[#allocation7 + $0xb0] sm:$0xff]  ;;  %v308_v24 = vld [vmem:[#allocation7 + $0x20] sm:$0xff] }
  0x2d   :  { %210 = vmatpush.msra.mxu3 %v75_v60  ;;  %188 = vmatpush.msra.mxu2 %v70_v61  ;;  %v324_v25 = vld [vmem:[#allocation7 + $0xa0] sm:$0xff]  ;;  %v307_v26 = vld [vmem:[#allocation7 + $0x18] sm:$0xff]  ;;  %v306_v28 = vld [vmem:[#allocation7 + $0x10] sm:$0xff] }
  0x2e   :  { %143 = vmatpush.msra.mxu0 %v64_v52  ;;  %166 = vmatpush.msra.mxu1 %v65_v53  ;;  %v323_v27 = vld [vmem:[#allocation7 + $0x98] sm:$0xff]  ;;  %v322_v29 = vld [vmem:[#allocation7 + $0x90] sm:$0xff]  ;;  %v305_v34 = vld [vmem:[#allocation7 + $0x8] sm:$0xff] }
  0x2f   :  { %144 = vmatmul.f32.vlgmr.msra.gmra.mxu0 %v62_v54  ;;  %167 = vmatmul.f32.vlgmr.msra.gmra.mxu1 %v62_v54  ;;  %v321_v35 = vld [vmem:[#allocation7 + $0x88] sm:$0xff]  ;;  %v304_v36 = vld [vmem:[#allocation7] sm:$0xff] }
  0x30   :  { %211 = vmatpush.msra.mxu3 %v71_v62  ;;  %189 = vmatpush.msra.mxu2 %v66_v0  ;;  %v320_v37 = vld [vmem:[#allocation7 + $0x80] sm:$0xff] }
  0x31   :  { %190 = vmatmul.f32.vlgmr.msra.gmra.mxu2 %v62_v54  ;;  %336 = vmatpush.msrb.mxu0 %v319_v2 }
  0x32   :  { %212 = vmatpush.msra.mxu3 %v67_v1  ;;  %359 = vmatpush.msrb.mxu1 %v335_v3 }
  0x33   :  { %213 = vmatmul.f32.vlgmr.msra.gmra.mxu3 %v62_v54  ;;  %408 = vmatpush.msrb.mxu2 %v319_v2 }
  0x34   :  { %424 = vmatpush.msrb.mxu3 %v335_v3  ;;  %337 = vmatpush.msrb.mxu0 %v318_v4 }
  0x35   :  { %360 = vmatpush.msrb.mxu1 %v334_v5  ;;  %409 = vmatpush.msrb.mxu2 %v318_v4 }
  0x36   :  { %425 = vmatpush.msrb.mxu3 %v334_v5  ;;  %338 = vmatpush.msrb.mxu0 %v317_v6 }
  0x37   :  { %147 = vmatmul.f32.gmra.mxu0 %v63_v63  ;;  %170 = vmatmul.f32.gmra.mxu1 %v63_v63 }
  0x38   :  { %361 = vmatpush.msrb.mxu1 %v333_v7  ;;  %410 = vmatpush.msrb.mxu2 %v317_v6 }
  0x39   :  { %193 = vmatmul.f32.gmra.mxu2 %v63_v63  ;;  %426 = vmatpush.msrb.mxu3 %v333_v7 }
  0x3a   :  { %339 = vmatpush.msrb.mxu0 %v316_v8  ;;  %362 = vmatpush.msrb.mxu1 %v332_v9 }
  0x3b   :  { %216 = vmatmul.f32.gmra.mxu3 %v63_v63  ;;  %411 = vmatpush.msrb.mxu2 %v316_v8 }
  0x3c   :  { %427 = vmatpush.msrb.mxu3 %v332_v9  ;;  %340 = vmatpush.msrb.mxu0 %v315_v10 }
  0x3d   :  { %363 = vmatpush.msrb.mxu1 %v331_v11  ;;  %412 = vmatpush.msrb.mxu2 %v315_v10 }
  0x3e   :  { %428 = vmatpush.msrb.mxu3 %v331_v11  ;;  %341 = vmatpush.msrb.mxu0 %v314_v12 }
  0x3f   :  { %364 = vmatpush.msrb.mxu1 %v330_v13  ;;  %413 = vmatpush.msrb.mxu2 %v314_v12 }
  0x40   :  { %429 = vmatpush.msrb.mxu3 %v330_v13  ;;  %342 = vmatpush.msrb.mxu0 %v313_v14 }
  0x41   :  { %365 = vmatpush.msrb.mxu1 %v329_v15  ;;  %414 = vmatpush.msrb.mxu2 %v313_v14 }
  0x42   :  { %430 = vmatpush.msrb.mxu3 %v329_v15  ;;  %343 = vmatpush.msrb.mxu0 %v312_v16 }
  0x43   :  { %366 = vmatpush.msrb.mxu1 %v328_v17  ;;  %415 = vmatpush.msrb.mxu2 %v312_v16 }
  0x44   :  { %431 = vmatpush.msrb.mxu3 %v328_v17  ;;  %344 = vmatpush.msrb.mxu0 %v311_v18 }
  0x45   :  { %367 = vmatpush.msrb.mxu1 %v327_v19  ;;  %416 = vmatpush.msrb.mxu2 %v311_v18 }
  0x46   :  { %432 = vmatpush.msrb.mxu3 %v327_v19  ;;  %345 = vmatpush.msrb.mxu0 %v310_v20 }
  0x47   :  { %368 = vmatpush.msrb.mxu1 %v326_v21  ;;  %417 = vmatpush.msrb.mxu2 %v310_v20 }
  0x48   :  { %433 = vmatpush.msrb.mxu3 %v326_v21  ;;  %346 = vmatpush.msrb.mxu0 %v309_v22 }
  0x49   :  { %369 = vmatpush.msrb.mxu1 %v325_v23  ;;  %418 = vmatpush.msrb.mxu2 %v309_v22 }
  0x4a   :  { %434 = vmatpush.msrb.mxu3 %v325_v23  ;;  %347 = vmatpush.msrb.mxu0 %v308_v24 }
  0x4b   :  { %370 = vmatpush.msrb.mxu1 %v324_v25  ;;  %419 = vmatpush.msrb.mxu2 %v308_v24 }
  0x4c   :  { %435 = vmatpush.msrb.mxu3 %v324_v25  ;;  %348 = vmatpush.msrb.mxu0 %v307_v26 }
  0x4d   :  { %371 = vmatpush.msrb.mxu1 %v323_v27  ;;  %420 = vmatpush.msrb.mxu2 %v307_v26 }
  0x4e   :  { %436 = vmatpush.msrb.mxu3 %v323_v27  ;;  %349 = vmatpush.msrb.mxu0 %v306_v28 }
  0x4f   :  { %372 = vmatpush.msrb.mxu1 %v322_v29  ;;  %421 = vmatpush.msrb.mxu2 %v306_v28 }
  0x50   :  { %437 = vmatpush.msrb.mxu3 %v322_v29  ;;  %350 = vmatpush.msrb.mxu0 %v305_v34 }
  0x51   :  { %373 = vmatpush.msrb.mxu1 %v321_v35  ;;  %422 = vmatpush.msrb.mxu2 %v305_v34 }
  0x52   :  { %438 = vmatpush.msrb.mxu3 %v321_v35  ;;  %351 = vmatpush.msrb.mxu0 %v304_v36 }
  0x53   :  { %374 = vmatpush.msrb.mxu1 %v320_v37  ;;  %423 = vmatpush.msrb.mxu2 %v304_v36 }
  0x54   :  { %439 = vmatpush.msrb.mxu3 %v320_v37 }
  0xac   :  { %v609_v30 = vpop.f32.mrf.mxu0  ;;  %v611_v31 = vpop.f32.mrf.mxu1 }
  0xad   :  { %v404_v32 = vmul.f32 -1.442695, %v609_v30  ;;  %v405_v33 = vmul.f32 -1.442695, %v611_v31 }
  0xaf   :  { %448 = vpow2.f32 %v404_v32 }
  0xb0   :  { %450 = vpow2.f32 %v405_v33 }
  0xb4   :  { %v615_v38 = vpop.f32.mrf.mxu0  ;;  %v617_v39 = vpop.f32.mrf.mxu1 }
  0xb5   :  { %v449_v40 = vpop.eup %448  ;;  %v406_v41 = vmul.f32 -1.442695, %v615_v38  ;;  %v407_v44 = vmul.f32 -1.442695, %v617_v39  ;;  %v191_v2 = vpop.f32.mrf.mxu2 }
  0xb6   :  { %v451_v42 = vpop.eup %450  ;;  %v232_v43 = vadd.f32 1.0, %v449_v40  ;;  %v214_v12 = vpop.f32.mrf.mxu3 }
  0xb7   :  { %v233_v45 = vadd.f32 1.0, %v451_v42  ;;  %452 = vpow2.f32 %v406_v41 }
  0xb8   :  { %454 = vrcp.f32 %v232_v43  ;;  %v245_v55 = vand.u32 2147483647, %v232_v43  ;;  %v247_v56 = vand.u32 2147483648, %v232_v43  ;;  %vm241_vm2 = vweird.f32 %v232_v43 }
  0xb9   :  { %456 = vrcp.f32 %v233_v45  ;;  %v262_v59 = vand.u32 2147483648, %v233_v45  ;;  %v260_v61 = vand.u32 2147483647, %v233_v45  ;;  %vm256_vm4 = vweird.f32 %v233_v45 }
  0xba   :  { %458 = vpow2.f32 %v407_v44  ;;  %v248_v0 = vor.u32 1.1754944e-38, %v247_v56  ;;  %vm246_vm5 = vcmp.eq.f32.partialorder %v245_v55, 8.507059e+37 }
  0xbb   :  { %v263_v4 = vor.u32 1.1754944e-38, %v262_v59  ;;  %vm261_vm7 = vcmp.eq.f32.partialorder %v260_v61, 8.507059e+37 }
  0xbd   :  { %v453_v46 = vpop.eup %452  ;;  %v194_v29 = vpop.f32.mrf.mxu2 }
  0xbe   :  { %v455_v47 = vpop.eup %454  ;;  %v234_v48 = vadd.f32 1.0, %v453_v46  ;;  %v217_v35 = vpop.f32.mrf.mxu3 }
  0xbf   :  { %v457_v49 = vpop.eup %456  ;;  %v237_v50 = vmul.f32 %v455_v47, %v232_v43  ;;  %vm242_vm0 = vweird.f32 %v455_v47 }
  0xc0   :  { %v459_v51 = vpop.eup %458  ;;  %v252_v52 = vmul.f32 %v457_v49, %v233_v45  ;;  %460 = vrcp.f32 %v234_v48  ;;  %vm257_vm1 = vweird.f32 %v457_v49  ;;  %vm243_vm3 = vmor %vm241_vm2, %vm242_vm0  ;;  %v277_v14 = vand.u32 2147483648, %v234_v48 }
  0xc1   :  { %v238_v53 = vsub.f32 1.0, %v237_v50  ;;  %v235_v54 = vadd.f32 1.0, %v459_v51  ;;  %vm258_vm6 = vmor %vm256_vm4, %vm257_vm1  ;;  %v275_v17 = vand.u32 2147483647, %v234_v48  ;;  %vm271_vm9 = vweird.f32 %v234_v48 }
  0xc2   :  { %v253_v57 = vsub.f32 1.0, %v252_v52  ;;  %v278_v23 = vor.u32 1.1754944e-38, %v277_v14 }
  0xc3   :  { %v239_v58 = vmul.f32 %v455_v47, %v238_v53  ;;  %462 = vrcp.f32 %v235_v54  ;;  %v292_v22 = vand.u32 2147483648, %v235_v54  ;;  %v290_v25 = vand.u32 2147483647, %v235_v54 }
  0xc4   :  { %v254_v60 = vmul.f32 %v457_v49, %v253_v57  ;;  %vm276_vm12 = vcmp.eq.f32.partialorder %v275_v17, 8.507059e+37  ;;  %vm286_vm13 = vweird.f32 %v235_v54 }
  0xc5   :  { %v240_v62 = vadd.f32 %v455_v47, %v239_v58  ;;  %vm291_vm15 = vcmp.eq.f32.partialorder %v290_v25, 8.507059e+37 }
  0xc6   :  { %v461_v63 = vpop.eup %460  ;;  %v255_v1 = vadd.f32 %v457_v49, %v254_v60 }
  0xc7   :  { %v244_v3 = vsel %vm243_vm3, %v455_v47, %v240_v62  ;;  %v267_v5 = vmul.f32 %v461_v63, %v234_v48  ;;  %vm272_vm8 = vweird.f32 %v461_v63 }
  0xc8   :  { %v249_v6 = vsel %vm246_vm5, %v248_v0, %v244_v3  ;;  %v259_v7 = vsel %vm258_vm6, %v457_v49, %v255_v1  ;;  %vm273_vm10 = vmor %vm271_vm9, %vm272_vm8 }
  0xc9   :  { %v463_v8 = vpop.eup %462  ;;  %v296_v9 = vmul.f32 %v249_v6, %v609_v30  ;;  %v264_v10 = vsel %vm261_vm7, %v263_v4, %v259_v7  ;;  %v268_v11 = vsub.f32 1.0, %v267_v5 }
  0xca   :  { %v297_v13 = vmul.f32 %v264_v10, %v611_v31  ;;  %v282_v15 = vmul.f32 %v463_v8, %v235_v54  ;;  %vm287_vm11 = vweird.f32 %v463_v8  ;;  %v293_v31 = vor.u32 1.1754944e-38, %v292_v22 }
  0xcb   :  { %v269_v16 = vmul.f32 %v461_v63, %v268_v11  ;;  %v300_v18 = vmul.f32 %v296_v9, %v191_v2  ;;  %vm288_vm14 = vmor %vm286_vm13, %vm287_vm11 }
  0xcc   :  { %v283_v19 = vsub.f32 1.0, %v282_v15  ;;  %v301_v20 = vmul.f32 %v297_v13, %v214_v12 }
  0xcd   :  { %v270_v21 = vadd.f32 %v461_v63, %v269_v16  ;;  %352 = vmatmul.f32.vlgmr.msrb.gmra.mxu0 %v300_v18 }
  0xce   :  { %v284_v24 = vmul.f32 %v463_v8, %v283_v19  ;;  %375 = vmatmul.f32.vlgmr.msrb.gmra.mxu1 %v301_v20 }
  0xcf   :  { %v274_v26 = vsel %vm273_vm10, %v461_v63, %v270_v21 }
  0xd0   :  { %v279_v27 = vsel %vm276_vm12, %v278_v23, %v274_v26  ;;  %v285_v28 = vadd.f32 %v463_v8, %v284_v24 }
  0xd1   :  { %v298_v30 = vmul.f32 %v279_v27, %v615_v38 }
  0xd2   :  { %v289_v32 = vsel %vm288_vm14, %v463_v8, %v285_v28 }
  0xd3   :  { %v294_v33 = vsel %vm291_vm15, %v293_v31, %v289_v32  ;;  %v302_v34 = vmul.f32 %v298_v30, %v194_v29 }
  0xd4   :  { %v299_v36 = vmul.f32 %v294_v33, %v617_v39 }
  0xd5   :  { %355 = vmatmul.f32.vlgmr.msrb.gmra.mxu2 %v302_v34 }
  0xd6   :  { %v303_v37 = vmul.f32 %v299_v36, %v217_v35 }
  0xd8   :  { %378 = vmatmul.f32.vlgmr.msrb.gmra.mxu3 %v303_v37 }
 0x14a   :  { %v353_v40 = vpop.f32.mrf.mxu0 }
 0x14b   :  { %v376_v41 = vpop.f32.mrf.mxu1 }
 0x14c   :  { %v377_v42 = vadd.f32 %v376_v41, %v353_v40 }
 0x14e   :  { %382 = vst [vmem:[#allocation8] sm:$0xff] %v377_v42 }
 0x158   :  { %v356_v43 = vpop.f32.mrf.mxu2 }
 0x15b   :  { %v379_v38 = vpop.f32.mrf.mxu3 }
 0x15c   :  { %v380_v44 = vadd.f32 %v379_v38, %v356_v43 }
 0x15e   :  { %383 = vst [vmem:[#allocation8 + $0x8] sm:$0xff] %v380_v44 }
 0x15f   :  { %396 = dma.vmem_to_hbm [thread:$0]  %s389_s29, 256, %s391_s5, [#allocation4], %s570_s24, %s570_s24, %s571_s25  }
 0x160   :  { %564 = dma.done.wait [#allocation4], 256  }
 0x161   :  { %565 = vsyncadd [#allocation4], 4294967040 }
 0x162   :  { %401 = vsyncpa [#allocation3], 1 }
 0x163   :  { %402 = vsyncpa [#allocation6], 1 }
 0x164   :  { %403 = vsyncpa [#allocation4], 1 }

</bundles_post_ra>
